<compile_context>
chip_gen: v5e
topology: v5e:2x2
jax: 0.10.0
libtpu: 0.0.40
codegen_flags: <defaults>
</compile_context>

<pallas_src>
import functools

import jax
import jax.numpy as jnp
from jax.experimental import pallas as pl
from jax.experimental.pallas import tpu as pltpu


# ----------------------------------------------------------------------------
# Pallas kernel: single-shot matmul with fused bias, optional residual, ReLU
# ----------------------------------------------------------------------------
def _matmul_bias_kernel(*refs, relu_out, has_res):
    if has_res:
        a_ref, b_ref, bias_ref, res_ref, o_ref = refs
    else:
        a_ref, b_ref, bias_ref, o_ref = refs
        res_ref = None
    # Full-K matmul on the MXU, f32 accumulation.
    acc = jnp.dot(a_ref[...], b_ref[...], preferred_element_type=jnp.float32)
    r = acc + bias_ref[...]
    if has_res:
        r = r + res_ref[...]
    if relu_out:
        r = jnp.maximum(r, 0.0)
    o_ref[...] = r.astype(o_ref.dtype)


def pallas_matmul_bias(a, b, bias, residual=None, *, relu_out=False):
    """out = maybe_relu(a @ b + bias [+ residual]).

    a:[M,K] (cast to bf16), b:[K,N] (cast to bf16), bias:[N] f32,
    residual:[M,N] f32 (optional).  No padding: block shapes either equal the
    full array dim or are 256-aligned tiles.  K is never split.
    """
    M, K = a.shape
    K2, N = b.shape
    assert K == K2

    tm = 256 if (M % 256 == 0) else M          # full-M block when M is small
    tn = 256 if (N % 256 == 0) else N          # 256-wide tiles for wide layers
    grid = (M // tm, N // tn)

    a_bf = a.astype(jnp.bfloat16)
    b_bf = b.astype(jnp.bfloat16)
    bias2 = bias.reshape(1, N).astype(jnp.float32)

    in_specs = [
        pl.BlockSpec((tm, K), lambda i, j: (i, 0)),
        pl.BlockSpec((K, tn), lambda i, j: (0, j)),
        pl.BlockSpec((1, tn), lambda i, j: (0, j)),
    ]
    args = [a_bf, b_bf, bias2]
    if residual is not None:
        in_specs.append(pl.BlockSpec((tm, tn), lambda i, j: (i, j)))
        args.append(residual.astype(jnp.float32))

    kernel = functools.partial(_matmul_bias_kernel, relu_out=relu_out,
                               has_res=residual is not None)
    out = pl.pallas_call(
        kernel,
        out_shape=jax.ShapeDtypeStruct((M, N), jnp.float32),
        grid_spec=pltpu.PrefetchScalarGridSpec(
            num_scalar_prefetch=0,
            grid=grid,
            in_specs=in_specs,
            out_specs=pl.BlockSpec((tm, tn), lambda i, j: (i, j)),
        ),
        compiler_params=pltpu.CompilerParams(
            dimension_semantics=("parallel", "parallel")),
    )(*args)
    return out


# ----------------------------------------------------------------------------
# JAX glue: im2col, conv+folded-BN (Pallas matmul), max-pool, blocks
# ----------------------------------------------------------------------------
def _extract_patches(x, kh, kw, stride, padding):
    """x: [B,H,W,C] -> ([B*OH*OW, kh*kw*C] ordered (kh,kw,c), (B,OH,OW))."""
    B, H, W, C = x.shape
    xp = jnp.pad(x, ((0, 0), (padding, padding), (padding, padding), (0, 0)))
    OH = (H + 2 * padding - kh) // stride + 1
    OW = (W + 2 * padding - kw) // stride + 1
    cols = []
    for i in range(kh):
        for j in range(kw):
            cols.append(xp[:, i:i + stride * OH:stride, j:j + stride * OW:stride, :])
    patches = jnp.stack(cols, axis=3)                 # [B,OH,OW,kh*kw,C]
    return patches.reshape(B * OH * OW, kh * kw * C), (B, OH, OW)
    # TODO(synk): for large resolutions, replace materialized im2col with a
    # (kh*kw)-axis accumulation of shifted-window matmuls to avoid 9x HBM traffic.


def conv_bn(x, w_oihw, bn, stride, padding, relu=False, residual=None):
    """conv2d (no bias) + eval-mode BatchNorm folded into weights,
    with the optional residual add and ReLU fused into the matmul epilogue."""
    gamma, beta, mean, var = bn
    scale = gamma / jnp.sqrt(var + 1e-5)
    w_f = w_oihw * scale[:, None, None, None]
    b_f = beta - mean * scale
    O, I, KH, KW = w_oihw.shape
    w_mat = jnp.transpose(w_f, (2, 3, 1, 0)).reshape(KH * KW * I, O)
    patches, (B, OH, OW) = _extract_patches(x, KH, KW, stride, padding)
    res2d = None if residual is None else residual.reshape(B * OH * OW, O)
    out = pallas_matmul_bias(patches, w_mat, b_f, res2d, relu_out=relu)
    return out.reshape(B, OH, OW, O)


def maxpool_3x3_s2_p1(x):
    B, H, W, C = x.shape
    neg = jnp.finfo(x.dtype).min
    xp = jnp.pad(x, ((0, 0), (1, 1), (1, 1), (0, 0)), constant_values=neg)
    OH = (H + 2 - 3) // 2 + 1
    OW = (W + 2 - 3) // 2 + 1
    out = None
    for i in range(3):
        for j in range(3):
            sl = xp[:, i:i + 2 * OH:2, j:j + 2 * OW:2, :]
            out = sl if out is None else jnp.maximum(out, sl)
    return out


def basic_block(x, p, stride):
    out1 = conv_bn(x, p['conv1_w'], p['bn1'], stride, 1, relu=True)
    if 'down_w' in p:
        identity = conv_bn(x, p['down_w'], p['down_bn'], stride, 0, relu=False)
    else:
        identity = x
    # conv2 + BN + residual add + ReLU fused into one Pallas call.
    return conv_bn(out1, p['conv2_w'], p['bn2'], 1, 1, relu=True, residual=identity)


def cnn_forward(params, x_nchw):
    x = jnp.transpose(x_nchw, (0, 2, 3, 1))   # NCHW -> NHWC
    x = conv_bn(x, params['conv1_w'], params['bn1'], stride=2, padding=3, relu=True)
    x = maxpool_3x3_s2_p1(x)
    for layer_name, stride in (('layer1', 1), ('layer2', 2), ('layer3', 2), ('layer4', 2)):
        b0, b1 = params[layer_name]
        x = basic_block(x, b0, stride)
        x = basic_block(x, b1, 1)
    feat = jnp.mean(x, axis=(1, 2))            # AdaptiveAvgPool2d((1,1)) + Flatten -> [B,512]
    # TODO(synk): Dropout(0.5) uses inference semantics (identity) for determinism.
    # ReLU applied in f32 before the bf16 cast (v5e has no bf16 VPU), then the
    # Linear(512, output_dim) runs as a single tiny full-shape Pallas block.
    feat = jnp.maximum(feat, 0.0)
    return pallas_matmul_bias(feat, params['fc_w'], params['fc_b'])


# ----------------------------------------------------------------------------
# Deterministic synthetic parameters (resnet18 topology; pretrained weights
# are not loadable here)
# ----------------------------------------------------------------------------
def make_cnn_params(key, output_dim):
    keys = iter(jax.random.split(key, 80))

    def init_conv(o, i, kh, kw):
        return jax.random.normal(next(keys), (o, i, kh, kw), jnp.float32) * (
            1.0 / (i * kh * kw) ** 0.5)

    def init_bn(c):
        k1, k2, k3, k4 = jax.random.split(next(keys), 4)
        gamma = 1.0 + 0.1 * jax.random.normal(k1, (c,), jnp.float32)
        beta = 0.1 * jax.random.normal(k2, (c,), jnp.float32)
        mean = 0.1 * jax.random.normal(k3, (c,), jnp.float32)
        var = 0.5 + jax.random.uniform(k4, (c,), jnp.float32)
        return (gamma, beta, mean, var)

    def block(cin, cout, down):
        b = {'conv1_w': init_conv(cout, cin, 3, 3), 'bn1': init_bn(cout),
             'conv2_w': init_conv(cout, cout, 3, 3), 'bn2': init_bn(cout)}
        if down:
            b['down_w'] = init_conv(cout, cin, 1, 1)
            b['down_bn'] = init_bn(cout)
        return b

    p = {'conv1_w': init_conv(64, 3, 7, 7), 'bn1': init_bn(64)}
    p['layer1'] = [block(64, 64, False), block(64, 64, False)]
    p['layer2'] = [block(64, 128, True), block(128, 128, False)]
    p['layer3'] = [block(128, 256, True), block(256, 256, False)]
    p['layer4'] = [block(256, 512, True), block(512, 512, False)]
    kw_, kb_ = jax.random.split(next(keys))
    p['fc_w'] = jax.random.normal(kw_, (512, output_dim), jnp.float32) * (1.0 / 512 ** 0.5)
    p['fc_b'] = 0.01 * jax.random.normal(kb_, (output_dim,), jnp.float32)
    return p


if __name__ == "__main__":
    key = jax.random.PRNGKey(0)
    kp, kx = jax.random.split(key)
    output_dim = 32
    params = make_cnn_params(kp, output_dim)
    x = jax.random.normal(kx, (2, 3, 32, 32), jnp.float32)   # NCHW, like PyTorch
    out = cnn_forward(params, x)
    out = jax.block_until_ready(out)
    assert out.shape == (2, output_dim) and out.dtype == jnp.float32
    print("KERNEL_OK")
</pallas_src>

<mosaic_0001>
module attributes {stable_mosaic.version = 11 : i64} {
  func.func @_matmul_bias_kernel(%arg0: i32, %arg1: i32, %arg2: memref<256x147xbf16, #tpu.memory_space<vmem>>, %arg3: memref<147x64xbf16, #tpu.memory_space<vmem>>, %arg4: memref<1x64xf32, #tpu.memory_space<vmem>>, %arg5: memref<256x64xf32, #tpu.memory_space<vmem>>) attributes {dimension_semantics = [#tpu.dimension_semantics<parallel>, #tpu.dimension_semantics<parallel>], iteration_bounds = array<i64: 2, 1>, scalar_prefetch = 0 : i64, scratch_operands = 0 : i64, tpu.core_type = #tpu.core_type<tc>, window_params = [{transform_indices = @transform_0, window_bounds = array<i64: 256, 147>}, {transform_indices = @transform_1, window_bounds = array<i64: 147, 64>}, {transform_indices = @transform_2, window_bounds = array<i64: 1, 64>}, {transform_indices = @transform_3, window_bounds = array<i64: 256, 64>}]} {
    %c0 = arith.constant 0 : index
    %c0_0 = arith.constant 0 : index
    %0 = vector.load %arg2[%c0, %c0_0] : memref<256x147xbf16, #tpu.memory_space<vmem>>, vector<256x147xbf16>
    %c0_1 = arith.constant 0 : index
    %c0_2 = arith.constant 0 : index
    %1 = vector.load %arg3[%c0_1, %c0_2] : memref<147x64xbf16, #tpu.memory_space<vmem>>, vector<147x64xbf16>
    %cst = arith.constant dense<0.000000e+00> : vector<256x64xf32>
    %2 = tpu.matmul %0, %1, %cst {dimension_numbers = #tpu.dot_dimension_numbers<[1], [0], [0], [1], [0, 0, 1, 1], [], []>} : vector<256x147xbf16>, vector<147x64xbf16>, vector<256x64xf32> -> vector<256x64xf32>
    %c0_3 = arith.constant 0 : index
    %c0_4 = arith.constant 0 : index
    %3 = vector.load %arg4[%c0_3, %c0_4] : memref<1x64xf32, #tpu.memory_space<vmem>>, vector<1x64xf32>
    %4 = vector.broadcast %3 : vector<1x64xf32> to vector<256x64xf32>
    %5 = arith.addf %2, %4 : vector<256x64xf32>
    %cst_5 = arith.constant 0.000000e+00 : f32
    %6 = vector.broadcast %cst_5 : f32 to vector<256x64xf32>
    %7 = arith.maximumf %5, %6 : vector<256x64xf32>
    %c0_6 = arith.constant 0 : index
    %c0_7 = arith.constant 0 : index
    %8 = vector.load %arg5[%c0_6, %c0_7] : memref<256x64xf32, #tpu.memory_space<vmem>>, vector<256x64xf32>
    tpu.vector_store %arg5[%c0_6, %c0_7], %7 {strides = array<i32>} : memref<256x64xf32, #tpu.memory_space<vmem>>, vector<256x64xf32>,
    return
  }
  func.func @transform_0(%arg0: i32, %arg1: i32) -> (i32, i32) {
    %c0_i32 = arith.constant 0 : i32
    %c0_i32_0 = arith.constant 0 : i32
    return %arg0, %c0_i32 : i32, i32
  }
  func.func @transform_1(%arg0: i32, %arg1: i32) -> (i32, i32) {
    %c0_i32 = arith.constant 0 : i32
    %c0_i32_0 = arith.constant 0 : i32
    return %c0_i32, %arg1 : i32, i32
  }
  func.func @transform_2(%arg0: i32, %arg1: i32) -> (i32, i32) {
    %c0_i32 = arith.constant 0 : i32
    %c0_i32_0 = arith.constant 0 : i32
    return %c0_i32, %arg1 : i32, i32
  }
  func.func @transform_3(%arg0: i32, %arg1: i32) -> (i32, i32) {
    %c0_i32 = arith.constant 0 : i32
    return %arg0, %arg1 : i32, i32
  }
}

</mosaic_0001>

<bundles_post_ra>
// kernel: tpu_custom_call.1
= control target key start
LH: loop header
LB: loop body
LE: loop exit
PB: predicated region body
PF: predicated region fallthrough
CT: control target
= control target key end

     0   :  { %s1203_s12 = smov 0   ;;  %s1205_s13 = smov 0   ;;  %s1464_s0 = inlined_call_operand.vmem [shape: bf16[512,147], index: 0, kind: input, shape index: {}]   ;;  %s1465_s1 = inlined_call_operand.vmem [shape: bf16[147,64], index: 1, kind: input, shape index: {}]   ;;  %s1466_s2 = inlined_call_operand.vmem [shape: f32[1,64], index: 2, kind: input, shape index: {}]   ;;  %s1467_s3 = inlined_call_operand.vmem [shape: f32[512,64], index: 3, kind: output, shape index: {}]  }
   0x1   :  { %s1207_s14 = smov 0  }
   0x2 LB: > { %s25_s15 = sadd.s32 1, %s1176_s13  ;;  %p892_p0 = scmp.ge.s32.totalorder %s1180_s14, 1  ;;  %s1180_s14 = sphi %s1207_s14, %s13_s14   ;;  %s1176_s13 = sphi %s1205_s13, %s1469_s13   ;;  %s1172_s12 = sphi %s1203_s12, %s1468_s12  }
   0x3   : > { %p27_p1 = scmp.ge.s32.totalorder %s25_s15, 2  ;;  %p170_p2 = scmp.lt.s32.totalorder %s1180_s14, 3 }
   0x5   : > { %s1471_s15 = smov (%p27_p1, %s25_s15), 0  ;;  %p171_p3 = pnand %p892_p0, %p170_p2 }
   0x6   : > { %s893_s20 = sshll.u32 (!%p171_p3), %s1172_s12, 5 }
   0x7   : > { %174 = sbr.rel (%p171_p3) target bundleno = 303 (0x12f), region = 32  ;;  %p206_p4 = scmp.lt.s32.totalorder (!%p171_p3), %s893_s20, 63 }
   0xc   : > { %v1120_v0 = vld [vmem:[%s1465_s1 + $0x38] sm:$0xff]  ;;  %v279_v1 = vld [vmem:[%s1465_s1 + $0x48] sm:$0x3]  ;;  %vm534_vm0 = vcmask 1040384   ;;  %vm535_vm1 = vcmask 1041408   ;;  %v1119_v3 = vld [vmem:[%s1465_s1 + $0x30] sm:$0xff] }
   0xd   : > { %v465_v2 = vunpack.c.l.b16 %v279_v1  ;;  %541 = vmatpush.bf16.msra.mxu0 %v1120_v0  ;;  %1122 = vmatpush.bf16.msra.mxu2 %v1120_v0  ;;  %v1182_v4 = vmov 65535   ;;  %s1473_s20 = smov (!%p206_p4, %s893_s20), 63  ;;  %v1118_v9 = vld [vmem:[%s1465_s1 + $0x28] sm:$0xff]  ;;  %v1121_v10 = vld [vmem:[%s1465_s1 + $0x40] sm:$0xff]  ;;  %vm485_vm2 = vcmask 154624   ;;  %v1116_v18 = vld [vmem:[%s1465_s1 + $0x18] sm:$0xff] }
   0xe   : > { %v536_v5 = vsel %vm534_vm0, 4294967295, %v1182_v4  ;;  %s1080_s25 = sshll.u32 %s1473_s20, 3  ;;  %v1117_v14 = vld [vmem:[%s1465_s1 + $0x20] sm:$0xff]  ;;  %v1115_v19 = vld [vmem:[%s1465_s1 + $0x10] sm:$0xff]  ;;  %v1114_v20 = vld [vmem:[%s1465_s1 + $0x8] sm:$0xff]  ;;  %vm751_vm3 = vcmask 523264  }
   0xf   : > { %v475_v6 = vpack.c.b16 %v465_v2, %v465_v2  ;;  %v537_v7 = vsel %vm535_vm1, %v536_v5, 0  ;;  %s1244_s30 = scalar_lea.vmem %s1464_s0, %s1080_s25  ;;  %v1113_v26 = vld [vmem:[%s1465_s1] sm:$0xff]  ;;  %s1352_s22 = scalar_lea.vmem %s1467_s3, %s1080_s25 }
  0x10   : > { %v1081_v11 = vld [vmem:[%s1244_s30 + $0x4] sm:$0xf]  ;;  %v902_v12 = vld [vmem:[%s1244_s30 + $0x8] sm:$0xf0]  ;;  %v1099_v15 = vld [vmem:[%s1244_s30 + $0x94] sm:$0xf] }
  0x11   : > { %v539_v8 = vand.u32 %v537_v7, %v475_v6  ;;  %542 = vmatpush.bf16.msra.mxu0 %v1119_v3  ;;  %1123 = vmatpush.bf16.msra.mxu2 %v1119_v3  ;;  %v905_v13 = vor.u32 %v1081_v11, %v902_v12  ;;  %v974_v16 = vld [vmem:[%s1244_s30 + $0x98] sm:$0xf0]  ;;  %v1083_v21 = vld [vmem:[%s1244_s30 + $0x14] sm:$0xf]  ;;  %v1101_v23 = vld [vmem:[%s1244_s30 + $0xa4] sm:$0xf] }
  0x12   : > { %v977_v17 = vor.u32 %v1099_v15, %v974_v16  ;;  %v910_v22 = vld [vmem:[%s1244_s30 + $0x18] sm:$0xf0]  ;;  %v982_v24 = vld [vmem:[%s1244_s30 + $0xa8] sm:$0xf0]  ;;  %v900_v27 = vld [vmem:[%s1244_s30] sm:$0xf] }
  0x13   : > { %636 = vmatpush.bf16.msra.mxu1 %v539_v8  ;;  %1130 = vmatpush.bf16.msra.mxu3 %v539_v8  ;;  %v913_v25 = vor.u32 %v1083_v21, %v910_v22  ;;  %v1082_v28 = vld [vmem:[%s1244_s30 + $0x4] sm:$0xf0]  ;;  %v964_v29 = vld [vmem:[%s1244_s30 + $0x80] sm:$0xf]  ;;  %v985_v31 = vor.u32 %v1101_v23, %v982_v24  ;;  %v1085_v34 = vld [vmem:[%s1244_s30 + $0x24] sm:$0xf] }
  0x14   : > { %v1098_v30 = vld [vmem:[%s1244_s30 + $0x84] sm:$0xf0]  ;;  %v901_v32 = vor.u32 %v1082_v28, %v900_v27  ;;  %v918_v35 = vld [vmem:[%s1244_s30 + $0x28] sm:$0xf0]  ;;  %v1103_v36 = vld [vmem:[%s1244_s30 + $0xb4] sm:$0xf] }
  0x15   : > { %543 = vmatpush.bf16.msra.mxu0 %v1118_v9  ;;  %1124 = vmatpush.bf16.msra.mxu2 %v1118_v9  ;;  %v965_v33 = vor.u32 %v1098_v30, %v964_v29  ;;  %v990_v37 = vld [vmem:[%s1244_s30 + $0xb8] sm:$0xf0]  ;;  %v921_v38 = vor.u32 %v1085_v34, %v918_v35  ;;  %v908_v39 = vld [vmem:[%s1244_s30 + $0x10] sm:$0xf]  ;;  %v1084_v40 = vld [vmem:[%s1244_s30 + $0x14] sm:$0xf0] }
  0x16   : > { %v972_v41 = vld [vmem:[%s1244_s30 + $0x90] sm:$0xf]  ;;  %v1100_v42 = vld [vmem:[%s1244_s30 + $0x94] sm:$0xf0]  ;;  %v993_v43 = vor.u32 %v1103_v36, %v990_v37  ;;  %v909_v44 = vor.u32 %v1084_v40, %v908_v39  ;;  %v1087_v46 = vld [vmem:[%s1244_s30 + $0x34] sm:$0xf] }
  0x17   : > { %637 = vmatpush.bf16.msra.mxu1 %v1121_v10  ;;  %1131 = vmatpush.bf16.msra.mxu3 %v1121_v10  ;;  %v973_v45 = vor.u32 %v1100_v42, %v972_v41  ;;  %v926_v47 = vld [vmem:[%s1244_s30 + $0x38] sm:$0xf0]  ;;  %v1105_v48 = vld [vmem:[%s1244_s30 + $0xc4] sm:$0xf]  ;;  %v998_v49 = vld [vmem:[%s1244_s30 + $0xc8] sm:$0xf0] }
  0x18   : > { %v929_v50 = vor.u32 %v1087_v46, %v926_v47  ;;  %v916_v51 = vld [vmem:[%s1244_s30 + $0x20] sm:$0xf]  ;;  %v1086_v52 = vld [vmem:[%s1244_s30 + $0x24] sm:$0xf0]  ;;  %v1001_v55 = vor.u32 %v1105_v48, %v998_v49  ;;  %v1089_v58 = vld [vmem:[%s1244_s30 + $0x44] sm:$0xf] }
  0x19   : > { %544 = vmatpush.bf16.msra.mxu0 %v1117_v14  ;;  %1125 = vmatpush.bf16.msra.mxu2 %v1117_v14  ;;  %v980_v53 = vld [vmem:[%s1244_s30 + $0xa0] sm:$0xf]  ;;  %v1102_v54 = vld [vmem:[%s1244_s30 + $0xa4] sm:$0xf0]  ;;  %v917_v56 = vor.u32 %v1086_v52, %v916_v51  ;;  %v934_v59 = vld [vmem:[%s1244_s30 + $0x48] sm:$0xf0] }
  0x1a   : > { %1062 = vmatmul.msk.bf16.vlgmr.msra.gmra.mxu1 %vm485_vm2, %v905_v13  ;;  %1071 = vmatmul.msk.bf16.vlgmr.msra.gmra.mxu3 %vm485_vm2, %v977_v17  ;;  %v981_v57 = vor.u32 %v1102_v54, %v980_v53  ;;  %v1107_v60 = vld [vmem:[%s1244_s30 + $0xd4] sm:$0xf]  ;;  %v1006_v61 = vld [vmem:[%s1244_s30 + $0xd8] sm:$0xf0]  ;;  %v937_v62 = vor.u32 %v1089_v58, %v934_v59  ;;  %v924_v63 = vld [vmem:[%s1244_s30 + $0x30] sm:$0xf] }
  0x1b   : > { %v1088_v0 = vld [vmem:[%s1244_s30 + $0x34] sm:$0xf0]  ;;  %v988_v1 = vld [vmem:[%s1244_s30 + $0xb0] sm:$0xf]  ;;  %v1009_v3 = vor.u32 %v1107_v60, %v1006_v61  ;;  %v1091_v6 = vld [vmem:[%s1244_s30 + $0x54] sm:$0xf] }
  0x1c   : > { %v1104_v2 = vld [vmem:[%s1244_s30 + $0xb4] sm:$0xf0]  ;;  %v925_v4 = vor.u32 %v1088_v0, %v924_v63  ;;  %v942_v7 = vld [vmem:[%s1244_s30 + $0x58] sm:$0xf0]  ;;  %v1109_v8 = vld [vmem:[%s1244_s30 + $0xe4] sm:$0xf] }
  0x1d   : > { %545 = vmatpush.bf16.msra.mxu0 %v1116_v18  ;;  %1126 = vmatpush.bf16.msra.mxu2 %v1116_v18  ;;  %v989_v5 = vor.u32 %v1104_v2, %v988_v1  ;;  %v1014_v9 = vld [vmem:[%s1244_s30 + $0xe8] sm:$0xf0]  ;;  %v945_v10 = vor.u32 %v1091_v6, %v942_v7  ;;  %v932_v11 = vld [vmem:[%s1244_s30 + $0x40] sm:$0xf]  ;;  %v1090_v12 = vld [vmem:[%s1244_s30 + $0x44] sm:$0xf0] }
  0x1e   : > { %v996_v13 = vld [vmem:[%s1244_s30 + $0xc0] sm:$0xf]  ;;  %v1106_v14 = vld [vmem:[%s1244_s30 + $0xc4] sm:$0xf0]  ;;  %v1017_v15 = vor.u32 %v1109_v8, %v1014_v9  ;;  %v933_v16 = vor.u32 %v1090_v12, %v932_v11  ;;  %v1093_v18 = vld [vmem:[%s1244_s30 + $0x64] sm:$0xf] }
  0x1f   : > { %v997_v17 = vor.u32 %v1106_v14, %v996_v13  ;;  %v1022_v21 = vld [vmem:[%s1244_s30 + $0xf8] sm:$0xf0]  ;;  %v940_v23 = vld [vmem:[%s1244_s30 + $0x50] sm:$0xf]  ;;  %v1092_v24 = vld [vmem:[%s1244_s30 + $0x54] sm:$0xf0] }
  0x20   : > { %v941_v28 = vor.u32 %v1092_v24, %v940_v23  ;;  %v1095_v30 = vld [vmem:[%s1244_s30 + $0x74] sm:$0xf]  ;;  %v1094_v34 = vld [vmem:[%s1244_s30 + $0x64] sm:$0xf0]  ;;  %v1012_v35 = vld [vmem:[%s1244_s30 + $0xe0] sm:$0xf] }
  0x21   : > { %546 = vmatpush.bf16.msra.mxu0 %v1115_v19  ;;  %1127 = vmatpush.bf16.msra.mxu2 %v1115_v19  ;;  %v950_v19 = vld [vmem:[%s1244_s30 + $0x68] sm:$0xf0]  ;;  %v1110_v36 = vld [vmem:[%s1244_s30 + $0xe4] sm:$0xf0]  ;;  %v1097_v39 = vld [vmem:[%s1244_s30 + $0x84] sm:$0xf] }
  0x22   : > { %v953_v22 = vor.u32 %v1093_v18, %v950_v19  ;;  %v966_v40 = vld [vmem:[%s1244_s30 + $0x88] sm:$0xf0]  ;;  %v956_v42 = vld [vmem:[%s1244_s30 + $0x70] sm:$0xf]  ;;  %v1112_v46 = vld [vmem:[%s1244_s30 + $0xf4] sm:$0xf0] }
  0x23   : > { %v969_v41 = vor.u32 %v1097_v39, %v966_v40  ;;  %v1344_v51 = vld [vmem:[%s1466_s2] ss:$0 sm:$0xff] }
  0x25   : > { %547 = vmatpush.bf16.msra.mxu0 %v1114_v20  ;;  %1128 = vmatpush.bf16.msra.mxu2 %v1114_v20  ;;  %v1111_v20 = vld [vmem:[%s1244_s30 + $0xf4] sm:$0xf] }
  0x26   : > { %v1025_v27 = vor.u32 %v1111_v20, %v1022_v21 }
  0x29   : > { %548 = vmatpush.bf16.msra.mxu0 %v1113_v26  ;;  %1129 = vmatpush.bf16.msra.mxu2 %v1113_v26  ;;  %v1108_v26 = vld [vmem:[%s1244_s30 + $0xd4] sm:$0xf0] }
  0x2a   : > { %1063 = vmatmul.msk.bf16.gmra.mxu1 %vm485_vm2, %v913_v25  ;;  %1072 = vmatmul.msk.bf16.gmra.mxu3 %vm485_vm2, %v985_v31  ;;  %v1004_v25 = vld [vmem:[%s1244_s30 + $0xd0] sm:$0xf]  ;;  %v958_v31 = vld [vmem:[%s1244_s30 + $0x78] sm:$0xf0] }
  0x2b   : > { %v1005_v29 = vor.u32 %v1108_v26, %v1004_v25 }
  0x2c   : > { %549 = vmatmul.bf16.vlgmr.msra.gmra.mxu0 %v901_v32  ;;  %589 = vmatmul.bf16.vlgmr.msra.gmra.mxu2 %v965_v33  ;;  %v961_v32 = vor.u32 %v1095_v30, %v958_v31  ;;  %v948_v33 = vld [vmem:[%s1244_s30 + $0x60] sm:$0xf] }
  0x2d   : > { %v949_v37 = vor.u32 %v1094_v34, %v948_v33 }
  0x3a   : > { %1064 = vmatmul.msk.bf16.gmra.mxu1 %vm485_vm2, %v921_v38  ;;  %1073 = vmatmul.msk.bf16.gmra.mxu3 %vm485_vm2, %v993_v43  ;;  %v1013_v38 = vor.u32 %v1110_v36, %v1012_v35  ;;  %v1096_v43 = vld [vmem:[%s1244_s30 + $0x74] sm:$0xf0] }
  0x3b   : > { %v957_v47 = vor.u32 %v1096_v43, %v956_v42 }
  0x3c   : > { %554 = vmatmul.bf16.gmra.mxu0 %v909_v44  ;;  %594 = vmatmul.bf16.gmra.mxu2 %v973_v45  ;;  %v1020_v45 = vld [vmem:[%s1244_s30 + $0xf0] sm:$0xf] }
  0x3d   : > { %v1021_v48 = vor.u32 %v1112_v46, %v1020_v45 }
  0x4a   : > { %1065 = vmatmul.msk.bf16.gmra.mxu1 %vm485_vm2, %v929_v50  ;;  %1074 = vmatmul.msk.bf16.gmra.mxu3 %vm485_vm2, %v1001_v55 }
  0x4c   : > { %559 = vmatmul.bf16.gmra.mxu0 %v917_v56  ;;  %599 = vmatmul.bf16.gmra.mxu2 %v981_v57 }
  0x5a   : > { %1066 = vmatmul.msk.bf16.gmra.mxu1 %vm485_vm2, %v937_v62  ;;  %1075 = vmatmul.msk.bf16.gmra.mxu3 %vm485_vm2, %v1009_v3 }
  0x5c   : > { %564 = vmatmul.bf16.gmra.mxu0 %v925_v4  ;;  %604 = vmatmul.bf16.gmra.mxu2 %v989_v5 }
  0x6a   : > { %1067 = vmatmul.msk.bf16.gmra.mxu1 %vm485_vm2, %v945_v10  ;;  %1076 = vmatmul.msk.bf16.gmra.mxu3 %vm485_vm2, %v1017_v15 }
  0x6c   : > { %569 = vmatmul.bf16.gmra.mxu0 %v933_v16  ;;  %609 = vmatmul.bf16.gmra.mxu2 %v997_v17 }
  0x7a   : > { %1068 = vmatmul.msk.bf16.gmra.mxu1 %vm485_vm2, %v953_v22  ;;  %1077 = vmatmul.msk.bf16.gmra.mxu3 %vm485_vm2, %v1025_v27 }
  0x7c   : > { %574 = vmatmul.bf16.gmra.mxu0 %v941_v28  ;;  %614 = vmatmul.bf16.gmra.mxu2 %v1005_v29 }
  0x8a   : > { %1069 = vmatmul.msk.bf16.gmra.mxu1 %vm485_vm2, %v961_v32 }
  0x8c   : > { %579 = vmatmul.bf16.gmra.mxu0 %v949_v37  ;;  %619 = vmatmul.bf16.gmra.mxu2 %v1013_v38 }
  0x97   : > { %v639_v44 = vpop.f32.mrf.mxu1 }
  0x9a   : > { %1070 = vmatmul.msk.bf16.gmra.mxu1 %vm485_vm2, %v969_v41 }
  0x9c   : > { %584 = vmatmul.bf16.gmra.mxu0 %v957_v47  ;;  %624 = vmatmul.bf16.gmra.mxu2 %v1021_v48 }
  0x9d   : > { %v684_v52 = vpop.f32.mrf.mxu3 }
  0x9f   : > { %v641_v49 = vpop.f32.mrf.mxu1 }
  0xa5   : > { %v686_v61 = vpop.f32.mrf.mxu3 }
  0xa7   : > { %v644_v50 = vpop.f32.mrf.mxu1 }
  0xa9   : > { %v550_v53 = vpop.f32.mrf.mxu0 }
  0xaa   : > { %v551_v54 = vadd.f32 %v1344_v51, %v550_v53 }
  0xac   : > { %v640_v55 = vadd.f32 %v639_v44, %v551_v54 }
  0xad   : > { %v689_v5 = vpop.f32.mrf.mxu3 }
  0xae   : > { %v719_v56 = vmax.f32 %v640_v55, 0.0 }
  0xaf   : > { %v646_v57 = vpop.f32.mrf.mxu1  ;;  %v1356_v58 = vpop.f32.mrf.mxu2 }
  0xb0   : > { %752 = vst.msk [vmem:[%s1352_s22] sm:$0xff] %vm751_vm3, %v719_v56 }
  0xb1   : > { %v552_v59 = vpop.f32.mrf.mxu0 }
  0xb2   : > { %v553_v60 = vadd.f32 %v1344_v51, %v552_v59 }
  0xb4   : > { %v642_v62 = vadd.f32 %v641_v49, %v553_v60 }
  0xb5   : > { %v691_v17 = vpop.f32.mrf.mxu3 }
  0xb6   : > { %v720_v63 = vmax.f32 %v642_v62, 0.0 }
  0xb7   : > { %v649_v0 = vpop.f32.mrf.mxu1  ;;  %v1361_v1 = vpop.f32.mrf.mxu2 }
  0xb8   : > { %753 = vst.msk [vmem:[%s1352_s22 + $0x8] sm:$0xff] %vm751_vm3, %v720_v63 }
  0xb9   : > { %v555_v2 = vpop.f32.mrf.mxu0 }
  0xba   : > { %v556_v3 = vadd.f32 %v1344_v51, %v555_v2 }
  0xbc   : > { %v645_v4 = vadd.f32 %v644_v50, %v556_v3 }
  0xbd   : > { %v694_v28 = vpop.f32.mrf.mxu3 }
  0xbe   : > { %v721_v6 = vmax.f32 %v645_v4, 0.0 }
  0xbf   : > { %v651_v7 = vpop.f32.mrf.mxu1  ;;  %v595_v8 = vpop.f32.mrf.mxu2 }
  0xc0   : > { %754 = vst.msk [vmem:[%s1352_s22 + $0x10] sm:$0xff] %vm751_vm3, %v721_v6  ;;  %v596_v9 = vadd.f32 %v1344_v51, %v595_v8 }
  0xc1   : > { %v557_v10 = vpop.f32.mrf.mxu0 }
  0xc2   : > { %v558_v11 = vadd.f32 %v1344_v51, %v557_v10  ;;  %v685_v12 = vadd.f32 %v684_v52, %v596_v9 }
  0xc4   : > { %v647_v13 = vadd.f32 %v646_v57, %v558_v11  ;;  %v737_v14 = vmax.f32 %v685_v12, 0.0 }
  0xc5   : > { %v696_v41 = vpop.f32.mrf.mxu3 }
  0xc6   : > { %v722_v15 = vmax.f32 %v647_v13, 0.0  ;;  %770 = vst.msk [vmem:[%s1352_s22 + $0x90] sm:$0xff] %vm751_vm3, %v737_v14 }
  0xc7   : > { %v654_v16 = vpop.f32.mrf.mxu1  ;;  %v597_v18 = vpop.f32.mrf.mxu2 }
  0xc8   : > { %755 = vst.msk [vmem:[%s1352_s22 + $0x18] sm:$0xff] %vm751_vm3, %v722_v15  ;;  %v598_v19 = vadd.f32 %v1344_v51, %v597_v18 }
  0xc9   : > { %v560_v20 = vpop.f32.mrf.mxu0 }
  0xca   : > { %v561_v21 = vadd.f32 %v1344_v51, %v560_v20  ;;  %v687_v22 = vadd.f32 %v686_v61, %v598_v19 }
  0xcc   : > { %v650_v23 = vadd.f32 %v649_v0, %v561_v21  ;;  %v738_v24 = vmax.f32 %v687_v22, 0.0 }
  0xcd   : > { %v699_v54 = vpop.f32.mrf.mxu3 }
  0xce   : > { %v723_v25 = vmax.f32 %v650_v23, 0.0  ;;  %771 = vst.msk [vmem:[%s1352_s22 + $0x98] sm:$0xff] %vm751_vm3, %v738_v24 }
  0xcf   : > { %v656_v26 = vpop.f32.mrf.mxu1  ;;  %v600_v27 = vpop.f32.mrf.mxu2 }
  0xd0   : > { %756 = vst.msk [vmem:[%s1352_s22 + $0x20] sm:$0xff] %vm751_vm3, %v723_v25  ;;  %v601_v29 = vadd.f32 %v1344_v51, %v600_v27 }
  0xd1   : > { %v562_v30 = vpop.f32.mrf.mxu0 }
  0xd2   : > { %v563_v31 = vadd.f32 %v1344_v51, %v562_v30  ;;  %v690_v32 = vadd.f32 %v689_v5, %v601_v29 }
  0xd4   : > { %v652_v33 = vadd.f32 %v651_v7, %v563_v31  ;;  %v739_v34 = vmax.f32 %v690_v32, 0.0 }
  0xd5   : > { %v701_v5 = vpop.f32.mrf.mxu3 }
  0xd6   : > { %v724_v35 = vmax.f32 %v652_v33, 0.0  ;;  %772 = vst.msk [vmem:[%s1352_s22 + $0xa0] sm:$0xff] %vm751_vm3, %v739_v34 }
  0xd7   : > { %v659_v36 = vpop.f32.mrf.mxu1  ;;  %v602_v37 = vpop.f32.mrf.mxu2 }
  0xd8   : > { %757 = vst.msk [vmem:[%s1352_s22 + $0x28] sm:$0xff] %vm751_vm3, %v724_v35  ;;  %v603_v38 = vadd.f32 %v1344_v51, %v602_v37 }
  0xd9   : > { %v565_v39 = vpop.f32.mrf.mxu0 }
  0xda   : > { %v566_v40 = vadd.f32 %v1344_v51, %v565_v39  ;;  %v692_v42 = vadd.f32 %v691_v17, %v603_v38 }
  0xdc   : > { %v655_v43 = vadd.f32 %v654_v16, %v566_v40  ;;  %v740_v44 = vmax.f32 %v692_v42, 0.0 }
  0xdd   : > { %v704_v16 = vpop.f32.mrf.mxu3 }
  0xde   : > { %v725_v45 = vmax.f32 %v655_v43, 0.0  ;;  %773 = vst.msk [vmem:[%s1352_s22 + $0xa8] sm:$0xff] %vm751_vm3, %v740_v44 }
  0xdf   : > { %v661_v46 = vpop.f32.mrf.mxu1  ;;  %v605_v47 = vpop.f32.mrf.mxu2 }
  0xe0   : > { %758 = vst.msk [vmem:[%s1352_s22 + $0x30] sm:$0xff] %vm751_vm3, %v725_v45  ;;  %v606_v48 = vadd.f32 %v1344_v51, %v605_v47 }
  0xe1   : > { %v567_v49 = vpop.f32.mrf.mxu0 }
  0xe2   : > { %v568_v50 = vadd.f32 %v1344_v51, %v567_v49  ;;  %v695_v52 = vadd.f32 %v694_v28, %v606_v48 }
  0xe4   : > { %v657_v53 = vadd.f32 %v656_v26, %v568_v50  ;;  %v741_v55 = vmax.f32 %v695_v52, 0.0  ;;  %v591_v52 = vadd.f32 %v1344_v51, %v1356_v58 }
  0xe5   : > { %v706_v29 = vpop.f32.mrf.mxu3 }
  0xe6   : > { %v726_v56 = vmax.f32 %v657_v53, 0.0  ;;  %774 = vst.msk [vmem:[%s1352_s22 + $0xb0] sm:$0xff] %vm751_vm3, %v741_v55 }
  0xe7   : > { %v664_v57 = vpop.f32.mrf.mxu1  ;;  %v607_v59 = vpop.f32.mrf.mxu2 }
  0xe8   : > { %759 = vst.msk [vmem:[%s1352_s22 + $0x38] sm:$0xff] %vm751_vm3, %v726_v56  ;;  %v608_v60 = vadd.f32 %v1344_v51, %v607_v59 }
  0xe9   : > { %v570_v61 = vpop.f32.mrf.mxu0 }
  0xea   : > { %v571_v62 = vadd.f32 %v1344_v51, %v570_v61  ;;  %v697_v63 = vadd.f32 %v696_v41, %v608_v60 }
  0xec   : > { %v660_v0 = vadd.f32 %v659_v36, %v571_v62  ;;  %v742_v2 = vmax.f32 %v697_v63, 0.0 }
  0xed   : > { %v709_v41 = vpop.f32.mrf.mxu3 }
  0xee   : > { %v727_v3 = vmax.f32 %v660_v0, 0.0  ;;  %775 = vst.msk [vmem:[%s1352_s22 + $0xb8] sm:$0xff] %vm751_vm3, %v742_v2  ;;  %v593_v2 = vadd.f32 %v1344_v51, %v1361_v1 }
  0xef   : > { %v666_v4 = vpop.f32.mrf.mxu1  ;;  %v610_v6 = vpop.f32.mrf.mxu2 }
  0xf0   : > { %760 = vst.msk [vmem:[%s1352_s22 + $0x40] sm:$0xff] %vm751_vm3, %v727_v3  ;;  %v611_v7 = vadd.f32 %v1344_v51, %v610_v6 }
  0xf1   : > { %v572_v8 = vpop.f32.mrf.mxu0 }
  0xf2   : > { %v573_v9 = vadd.f32 %v1344_v51, %v572_v8  ;;  %v700_v10 = vadd.f32 %v699_v54, %v611_v7 }
  0xf4   : > { %v662_v11 = vadd.f32 %v661_v46, %v573_v9  ;;  %v743_v12 = vmax.f32 %v700_v10, 0.0 }
  0xf5   : > { %v711_v55 = vpop.f32.mrf.mxu3 }
  0xf6   : > { %v728_v13 = vmax.f32 %v662_v11, 0.0  ;;  %776 = vst.msk [vmem:[%s1352_s22 + $0xc0] sm:$0xff] %vm751_vm3, %v743_v12 }
  0xf7   : > { %v669_v14 = vpop.f32.mrf.mxu1  ;;  %v612_v15 = vpop.f32.mrf.mxu2 }
  0xf8   : > { %761 = vst.msk [vmem:[%s1352_s22 + $0x48] sm:$0xff] %vm751_vm3, %v728_v13  ;;  %v613_v17 = vadd.f32 %v1344_v51, %v612_v15 }
  0xf9   : > { %v575_v18 = vpop.f32.mrf.mxu0 }
  0xfa   : > { %v576_v19 = vadd.f32 %v1344_v51, %v575_v18  ;;  %v702_v20 = vadd.f32 %v701_v5, %v613_v17 }
  0xfc   : > { %v665_v21 = vadd.f32 %v664_v57, %v576_v19  ;;  %v744_v22 = vmax.f32 %v702_v20, 0.0 }
  0xfd   : > { %v714_v7 = vpop.f32.mrf.mxu3 }
  0xfe   : > { %v729_v23 = vmax.f32 %v665_v21, 0.0  ;;  %777 = vst.msk [vmem:[%s1352_s22 + $0xc8] sm:$0xff] %vm751_vm3, %v744_v22 }
  0xff   : > { %v671_v24 = vpop.f32.mrf.mxu1  ;;  %v615_v25 = vpop.f32.mrf.mxu2 }
 0x100   : > { %762 = vst.msk [vmem:[%s1352_s22 + $0x50] sm:$0xff] %vm751_vm3, %v729_v23  ;;  %v616_v26 = vadd.f32 %v1344_v51, %v615_v25 }
 0x101   : > { %v577_v27 = vpop.f32.mrf.mxu0 }
 0x102   : > { %v578_v28 = vadd.f32 %v1344_v51, %v577_v27  ;;  %v705_v30 = vadd.f32 %v704_v16, %v616_v26 }
 0x104   : > { %v667_v31 = vadd.f32 %v666_v4, %v578_v28  ;;  %v745_v32 = vmax.f32 %v705_v30, 0.0 }
 0x105   : > { %v716_v18 = vpop.f32.mrf.mxu3 }
 0x106   : > { %v730_v33 = vmax.f32 %v667_v31, 0.0  ;;  %778 = vst.msk [vmem:[%s1352_s22 + $0xd0] sm:$0xff] %vm751_vm3, %v745_v32 }
 0x107   : > { %v674_v34 = vpop.f32.mrf.mxu1  ;;  %v617_v35 = vpop.f32.mrf.mxu2 }
 0x108   : > { %763 = vst.msk [vmem:[%s1352_s22 + $0x58] sm:$0xff] %vm751_vm3, %v730_v33  ;;  %v618_v36 = vadd.f32 %v1344_v51, %v617_v35 }
 0x109   : > { %v580_v37 = vpop.f32.mrf.mxu0 }
 0x10a   : > { %v581_v38 = vadd.f32 %v1344_v51, %v580_v37  ;;  %v707_v39 = vadd.f32 %v706_v29, %v618_v36 }
 0x10c   : > { %v670_v40 = vadd.f32 %v669_v14, %v581_v38  ;;  %v746_v42 = vmax.f32 %v707_v39, 0.0 }
 0x10e   : > { %v731_v43 = vmax.f32 %v670_v40, 0.0  ;;  %779 = vst.msk [vmem:[%s1352_s22 + $0xd8] sm:$0xff] %vm751_vm3, %v746_v42 }
 0x10f   : > { %v676_v44 = vpop.f32.mrf.mxu1  ;;  %v620_v45 = vpop.f32.mrf.mxu2 }
 0x110   : > { %764 = vst.msk [vmem:[%s1352_s22 + $0x60] sm:$0xff] %vm751_vm3, %v731_v43  ;;  %v621_v46 = vadd.f32 %v1344_v51, %v620_v45 }
 0x111   : > { %v582_v47 = vpop.f32.mrf.mxu0 }
 0x112   : > { %v583_v48 = vadd.f32 %v1344_v51, %v582_v47  ;;  %v710_v49 = vadd.f32 %v709_v41, %v621_v46 }
 0x114   : > { %v672_v50 = vadd.f32 %v671_v24, %v583_v48  ;;  %v747_v53 = vmax.f32 %v710_v49, 0.0 }
 0x116   : > { %v732_v54 = vmax.f32 %v672_v50, 0.0  ;;  %780 = vst.msk [vmem:[%s1352_s22 + $0xe0] sm:$0xff] %vm751_vm3, %v747_v53 }
 0x117   : > { %v679_v56 = vpop.f32.mrf.mxu1  ;;  %v622_v59 = vpop.f32.mrf.mxu2 }
 0x118   : > { %v680_v57 = vadd.f32 %v679_v56, %v591_v52  ;;  %765 = vst.msk [vmem:[%s1352_s22 + $0x68] sm:$0xff] %vm751_vm3, %v732_v54  ;;  %v623_v61 = vadd.f32 %v1344_v51, %v622_v59 }
 0x119   : > { %v585_v62 = vpop.f32.mrf.mxu0 }
 0x11a   : > { %v735_v60 = vmax.f32 %v680_v57, 0.0  ;;  %v586_v63 = vadd.f32 %v1344_v51, %v585_v62  ;;  %v712_v58 = vadd.f32 %v711_v55, %v623_v61 }
 0x11c   : > { %768 = vst.msk [vmem:[%s1352_s22 + $0x80] sm:$0xff] %vm751_vm3, %v735_v60  ;;  %v675_v0 = vadd.f32 %v674_v34, %v586_v63  ;;  %v748_v3 = vmax.f32 %v712_v58, 0.0 }
 0x11e   : > { %v733_v4 = vmax.f32 %v675_v0, 0.0  ;;  %781 = vst.msk [vmem:[%s1352_s22 + $0xe8] sm:$0xff] %vm751_vm3, %v748_v3 }
 0x11f   : > { %v681_v5 = vpop.f32.mrf.mxu1  ;;  %v625_v8 = vpop.f32.mrf.mxu2 }
 0x120   : > { %v682_v6 = vadd.f32 %v681_v5, %v593_v2  ;;  %766 = vst.msk [vmem:[%s1352_s22 + $0x70] sm:$0xff] %vm751_vm3, %v733_v4  ;;  %v626_v10 = vadd.f32 %v1344_v51, %v625_v8 }
 0x121   : > { %v587_v11 = vpop.f32.mrf.mxu0 }
 0x122   : > { %v736_v9 = vmax.f32 %v682_v6, 0.0  ;;  %v588_v12 = vadd.f32 %v1344_v51, %v587_v11  ;;  %v715_v1 = vadd.f32 %v714_v7, %v626_v10 }
 0x124   : > { %769 = vst.msk [vmem:[%s1352_s22 + $0x88] sm:$0xff] %vm751_vm3, %v736_v9  ;;  %v677_v13 = vadd.f32 %v676_v44, %v588_v12  ;;  %v749_v14 = vmax.f32 %v715_v1, 0.0 }
 0x126   : > { %v734_v15 = vmax.f32 %v677_v13, 0.0  ;;  %782 = vst.msk [vmem:[%s1352_s22 + $0xf0] sm:$0xff] %vm751_vm3, %v749_v14 }
 0x127   : > { %v627_v16 = vpop.f32.mrf.mxu2 }
 0x128   : > { %767 = vst.msk [vmem:[%s1352_s22 + $0x78] sm:$0xff] %vm751_vm3, %v734_v15  ;;  %v628_v17 = vadd.f32 %v1344_v51, %v627_v16 }
 0x12a   : > { %v717_v19 = vadd.f32 %v716_v18, %v628_v17 }
 0x12c   : > { %v750_v20 = vmax.f32 %v717_v19, 0.0 }
 0x12e   : > { %783 = vst.msk [vmem:[%s1352_s22 + $0xf8] sm:$0xff] %vm751_vm3, %v750_v20 }
 0x12f PF: > { %s13_s14 = sadd.s32 1, %s1180_s14   ;;  %s1468_s12 = smov %s1176_s13 }
 0x130   : > { %p10_p5 = scmp.ge.s32.totalorder %s13_s14, 4   ;;  %s1469_s13 = smov %s1471_s15 }
 0x132   :  { %12 = sbr.rel (!%p10_p5) target bundleno = 2 (0x2), region = 68 }

</bundles_post_ra>
